<compile_context>
chip_gen: v5e
topology: v5e:2x2
jax: 0.10.0
libtpu: 0.0.40
codegen_flags: <defaults>
</compile_context>

<pallas_src>
import functools

import jax
import jax.numpy as jnp
from jax import lax
from jax.experimental import pallas as pl
from jax.experimental.pallas import tpu as pltpu

_LANE_WIDTHS = (2048, 1024, 512, 256, 128)   # preferred lane-dense widths
_MIN_KERNEL_ELEMS = 1024                     # below this, fused XLA beats a launch


# --------------------------------------------------------------------------- chip cfg
@functools.lru_cache(maxsize=1)
def _chip_config():
    """Generation-aware tuning knobs (shard count across TensorCores, block bytes)."""
    kind = ""
    try:
        kind = (jax.devices()[0].device_kind or "").lower()
    except Exception:  # pragma: no cover - no devices / unusual backend
        kind = ""
    two_cores = any(tag in kind for tag in ("v7", "tpu7", "7x"))   # v7x: 2 TCs/chip
    if two_cores or ("v6" in kind):
        reduce_blk = 4 << 20    # fast HBM: bigger steps amortize the ~0.35us/step tax
    else:
        reduce_blk = 2 << 20    # v5e / unknown: 2 MiB already <5% step overhead
    return {
        "num_shards": 2 if two_cores else 1,
        "reduce_block_bytes": reduce_blk,
        "none_block_bytes": 2 << 20,
    }


def _vmem_limit_bytes(double_buffered_bytes, f32_block_bytes, scratch_bytes=0):
    """Explicit scoped-VMEM budget: streams x 2 buffers + f32 temporaries + headroom."""
    need = (double_buffered_bytes            # BlockSpec double-buffered DMA streams
            + 3 * f32_block_bytes            # in-kernel f32 elementwise temporaries
            + scratch_bytes                  # accumulator scratch
            + (4 << 20))                     # Mosaic internal scratch headroom
    return int(max(need, 16 << 20))


# --------------------------------------------------------------------------- kernels
def _l1_reduce_kernel(*refs, tile_rows, acc_rows, blocks_per_shard, nblocks,
                      rows, cols, need_mask, has_weight):
    """Per-shard partial sum of |p - t| (* w).

    Grid = (num_shards, blocks_per_shard); the inner axis is the reduction axis.
    Each step folds its (tile_rows, cols) block into a small (acc_rows, cols) f32
    accumulator with pure-VPU vreg adds; the single cross-lane reduce + (1, 128)
    store happen only in the epilogue (last inner step).
    """
    if has_weight:
        p_ref, t_ref, w_ref, out_ref, acc_ref = refs
    else:
        p_ref, t_ref, out_ref, acc_ref = refs
        w_ref = None

    s = pl.program_id(0)
    i = pl.program_id(1)

    @pl.when(i == 0)
    def _():
        acc_ref[...] = jnp.zeros_like(acc_ref)

    diff = jnp.abs(p_ref[...].astype(jnp.float32) - t_ref[...].astype(jnp.float32))
    if w_ref is not None:
        diff = diff * w_ref[...].astype(jnp.float32)

    def accumulate(x):
        if tile_rows == acc_rows:
            acc_ref[...] += x
        else:
            # Sublane-aligned row-group fold: pure VPU adds, no XLU, tiny accumulator.
            acc_ref[...] += x.reshape(tile_rows // acc_rows, acc_rows, cols).sum(axis=0)

    if need_mask:
        # Only the globally-last (ragged tail) block and any clamped overrun block need
        # masking; interior steps take the cheap unmasked branch.
        g = s * blocks_per_shard + i          # unclamped global block index
        is_edge = g >= nblocks - 1

        @pl.when(jnp.logical_not(is_edge))
        def _():
            accumulate(diff)

        @pl.when(is_edge)
        def _():
            # Rows outside the array (ragged tail padding / the duplicated overrun
            # block) contribute exactly zero (select, so padding garbage is harmless).
            row0 = g * tile_rows
            row_ids = row0 + lax.broadcasted_iota(jnp.int32, diff.shape, 0)
            accumulate(jnp.where(row_ids < rows, diff, 0.0))
    else:
        accumulate(diff)

    @pl.when(i == pl.num_programs(1) - 1)
    def _():
        out_ref[...] = jnp.full((1, 128), jnp.sum(acc_ref[...]), dtype=jnp.float32)


def _l1_none_kernel(*refs, loss_weight, has_weight):
    """Elementwise loss_weight * |p - t| (* w).

    NOTE: the last row-block may be partial (ragged rows). Pallas pads the VMEM input
    block with unspecified values and drops the corresponding out-of-bounds writes on
    writeback, which is safe for this purely elementwise kernel. Do NOT reuse this
    kernel for a reduction without masking the padded rows.
    """
    if has_weight:
        p_ref, t_ref, w_ref, o_ref = refs
    else:
        p_ref, t_ref, o_ref = refs
        w_ref = None
    x = jnp.abs(p_ref[...].astype(jnp.float32) - t_ref[...].astype(jnp.float32))
    if w_ref is not None:
        x = x * w_ref[...].astype(jnp.float32)
    if loss_weight != 1.0:
        x = loss_weight * x
    o_ref[...] = x.astype(o_ref.dtype)


# --------------------------------------------------------------------------- helpers
def _pick_cols(n_elem):
    for c in _LANE_WIDTHS:
        if n_elem % c == 0:
            return c
    return None


def _pick_tile_rows(rows, cols, itemsize, target_bytes):
    """Row-tile size for ~target_bytes per input block (sublane-aligned)."""
    target_rows = max(1, target_bytes // (cols * itemsize))
    if target_rows >= rows:
        return rows                           # full second-minor dim: always legal
    tr = max(8, (target_rows // 8) * 8)       # sublane-tile aligned
    return min(tr, rows)


def _l1_fallback(pred, target, weight, loss_weight, reduction):
    """Plain fused-XLA path for tiny or non-128-divisible tensors (already roofline)."""
    loss = jnp.abs(pred.astype(jnp.float32) - target.astype(jnp.float32))
    if weight is not None:
        loss = loss * weight.astype(jnp.float32)
    if reduction == "mean":
        return jnp.float32(loss_weight) * jnp.mean(loss)
    if reduction == "sum":
        return jnp.float32(loss_weight) * jnp.sum(loss)
    return (loss_weight * loss).astype(pred.dtype)


# --------------------------------------------------------------------------- wrapper
def l1_loss(pred, target, weight=None, *, loss_weight=1.0, reduction="mean"):
    assert reduction in ("none", "mean", "sum"), f"Invalid reduction mode: {reduction}"
    assert pred.shape == target.shape
    if weight is not None:
        assert weight.shape == pred.shape, (
            "Weight tensor must have the same shape as loss tensor.")

    orig_shape = pred.shape
    n_elem = int(pred.size)
    itemsize = jnp.dtype(pred.dtype).itemsize
    cols = _pick_cols(n_elem)

    # Fast path: tiny tensors / element counts with no 128-aligned flattening.
    if n_elem < _MIN_KERNEL_ELEMS or cols is None:
        return _l1_fallback(pred, target, weight, loss_weight, reduction)

    rows = n_elem // cols
    cfg = _chip_config()
    has_weight = weight is not None

    # Lane-dense 2D views in the original dtype (pure layout plumbing, no pad/cast).
    operands = [pred.reshape(rows, cols), target.reshape(rows, cols)]
    if has_weight:
        operands.append(weight.reshape(rows, cols))

    if reduction == "none":
        tr = _pick_tile_rows(rows, cols, itemsize, cfg["none_block_bytes"])
        nblocks = pl.cdiv(rows, tr)
        tile = pl.BlockSpec((tr, cols), lambda i: (i, 0))
        f32_blk = tr * cols * 4
        dbuf = 2 * sum(tr * cols * jnp.dtype(o.dtype).itemsize for o in operands)
        dbuf += 2 * tr * cols * itemsize                     # output stream
        out = pl.pallas_call(
            functools.partial(_l1_none_kernel,
                              loss_weight=float(loss_weight),
                              has_weight=has_weight),
            out_shape=jax.ShapeDtypeStruct((rows, cols), pred.dtype),
            grid_spec=pltpu.PrefetchScalarGridSpec(
                num_scalar_prefetch=0,
                grid=(nblocks,),
                in_specs=[tile] * len(operands),
                out_specs=tile,
            ),
            compiler_params=pltpu.CompilerParams(
                dimension_semantics=("parallel",),
                vmem_limit_bytes=_vmem_limit_bytes(dbuf, f32_blk)),
        )(*operands)
        return out.reshape(orig_shape)

    # ---- mean / sum: streaming reduction (sharded across TensorCores on v7x) --------
    tr = _pick_tile_rows(rows, cols, itemsize, cfg["reduce_block_bytes"])
    nblocks = pl.cdiv(rows, tr)
    num_shards = cfg["num_shards"] if nblocks >= 2 else 1

    if num_shards > 1 and nblocks % num_shards != 0:
        # Avoid the wasted (clamped) overrun block: shrink the row tile in 8-row steps
        # until the block count divides evenly across the shards (bounded search).
        t = tr - 8
        lo = max(8, tr // 2)
        while t >= lo:
            if pl.cdiv(rows, t) % num_shards == 0:
                tr = t
                nblocks = pl.cdiv(rows, t)
                break
            t -= 8

    bps = pl.cdiv(nblocks, num_shards)          # blocks per shard
    overrun = (num_shards * bps != nblocks)     # last shard has a fake trailing block
    need_mask = (nblocks * tr != rows) or overrun
    acc_rows = 8 if (tr % 8 == 0) else tr       # small per-lane accumulator

    if overrun:
        def in_map(s, i):
            # Clamp the fake trailing block; its contribution is masked to zero.
            return (jnp.minimum(s * bps + i, nblocks - 1), 0)
    else:
        def in_map(s, i):
            return (s * bps + i, 0)
    tile = pl.BlockSpec((tr, cols), in_map)

    f32_blk = tr * cols * 4
    scratch_bytes = acc_rows * cols * 4
    dbuf = 2 * sum(tr * cols * jnp.dtype(o.dtype).itemsize for o in operands)

    partials = pl.pallas_call(
        functools.partial(_l1_reduce_kernel,
                          tile_rows=tr, acc_rows=acc_rows, blocks_per_shard=bps,
                          nblocks=nblocks, rows=rows, cols=cols,
                          need_mask=need_mask, has_weight=has_weight),
        out_shape=jax.ShapeDtypeStruct((1, 128 * num_shards), jnp.float32),
        grid_spec=pltpu.PrefetchScalarGridSpec(
            num_scalar_prefetch=0,
            grid=(num_shards, bps),
            in_specs=[tile] * len(operands),
            out_specs=pl.BlockSpec((1, 128), lambda s, i: (0, s)),
            scratch_shapes=[pltpu.VMEM((acc_rows, cols), jnp.float32)],
        ),
        compiler_params=pltpu.CompilerParams(
            dimension_semantics=("parallel", "arbitrary"),
            vmem_limit_bytes=_vmem_limit_bytes(dbuf, f32_blk, scratch_bytes)),
    )(*operands)

    # Each shard broadcast its scalar partial across its 128-lane block: take lane 0.
    total = jnp.sum(partials.reshape(num_shards, 128)[:, 0])
    if reduction == "mean":
        return jnp.float32(loss_weight) * total / jnp.float32(n_elem)
    return jnp.float32(loss_weight) * total  # 'sum'


# --------------------------------------------------------------------------- test
if __name__ == "__main__":
    key = jax.random.PRNGKey(0)
    k1, k2, k3 = jax.random.split(key, 3)

    # Small NCHW case (single lane-dense block through the Pallas kernels).
    N, C, H, W = 2, 4, 16, 16
    pred = jax.random.normal(k1, (N, C, H, W), jnp.float32)
    target = jax.random.normal(k2, (N, C, H, W), jnp.float32)
    weight = jax.random.uniform(k3, (N, C, H, W), jnp.float32)

    out_mean = jax.block_until_ready(l1_loss(pred, target))
    out_mean_w = jax.block_until_ready(
        l1_loss(pred, target, weight, loss_weight=0.5, reduction="mean"))
    out_sum = jax.block_until_ready(l1_loss(pred, target, reduction="sum"))
    out_none = jax.block_until_ready(l1_loss(pred, target, weight, reduction="none"))

    ref = jnp.abs(pred - target)
    assert jnp.allclose(out_mean, jnp.mean(ref), rtol=1e-5, atol=1e-5)
    assert jnp.allclose(out_mean_w, 0.5 * jnp.mean(ref * weight), rtol=1e-5, atol=1e-5)
    assert jnp.allclose(out_sum, jnp.sum(ref), rtol=1e-4, atol=1e-4)
    assert out_none.shape == (N, C, H, W)
    assert jnp.allclose(out_none, ref * weight, rtol=1e-5, atol=1e-5)

    # Medium case: multi-block tiling, tail-block-only masking, and (on 2-TC chips) the
    # even-block-count shard split.  2*4*325*1024 = 2,662,400 = 1300 rows x 2048 cols.
    N2, C2, H2, W2 = 2, 4, 325, 1024
    p_big = jax.random.normal(k1, (N2, C2, H2, W2), jnp.float32)
    t_big = jax.random.normal(k2, (N2, C2, H2, W2), jnp.float32)
    w_big = jax.random.uniform(k3, (N2, C2, H2, W2), jnp.float32)

    big_mean = jax.block_until_ready(l1_loss(p_big, t_big, w_big, reduction="mean"))
    big_sum = jax.block_until_ready(l1_loss(p_big, t_big, reduction="sum"))
    big_none = jax.block_until_ready(l1_loss(p_big, t_big, reduction="none"))

    ref_big = jnp.abs(p_big - t_big)
    assert jnp.allclose(big_mean, jnp.mean(ref_big * w_big), rtol=5e-4, atol=1e-5)
    assert jnp.allclose(big_sum, jnp.sum(ref_big), rtol=5e-4, atol=1e-2)
    assert big_none.shape == (N2, C2, H2, W2)
    assert jnp.allclose(big_none, ref_big, rtol=1e-5, atol=1e-5)

    # Non-128-divisible element count: fused-XLA fallback path.
    p_odd = jax.random.normal(k1, (3, 5, 7), jnp.float32)
    t_odd = jax.random.normal(k2, (3, 5, 7), jnp.float32)
    odd_mean = jax.block_until_ready(l1_loss(p_odd, t_odd, reduction="mean"))
    assert jnp.allclose(odd_mean, jnp.mean(jnp.abs(p_odd - t_odd)), rtol=1e-5, atol=1e-6)

    print("KERNEL_OK")
</pallas_src>

<mosaic_0001>
module attributes {stable_mosaic.version = 11 : i64} {
  func.func @_l1_reduce_kernel(%arg0: i32, %arg1: i32, %arg2: memref<1x2048xf32, #tpu.memory_space<vmem>>, %arg3: memref<1x2048xf32, #tpu.memory_space<vmem>>, %arg4: memref<1x128xf32, #tpu.memory_space<vmem>>, %arg5: memref<1x2048xf32, #tpu.memory_space<vmem>>) attributes {dimension_semantics = [#tpu.dimension_semantics<parallel>, #tpu.dimension_semantics<arbitrary>], iteration_bounds = array<i64: 1, 1>, scalar_prefetch = 0 : i64, scratch_operands = 1 : i64, tpu.core_type = #tpu.core_type<tc>, window_params = [{transform_indices = @transform_0, window_bounds = array<i64: 1, 2048>}, {transform_indices = @transform_1, window_bounds = array<i64: 1, 2048>}, {transform_indices = @transform_2, window_bounds = array<i64: 1, 128>}]} {
    %c0_i32 = arith.constant 0 : i32
    %0 = arith.cmpi eq, %arg1, %c0_i32 : i32
    %1 = arith.extui %0 : i1 to i32
    %c0_i32_0 = arith.constant 0 : i32
    %2 = arith.cmpi ne, %1, %c0_i32_0 : i32
    scf.if %2 {
      %cst = arith.constant 0.000000e+00 : f32
      %13 = vector.broadcast %cst : f32 to vector<1x2048xf32>
      %c0_10 = arith.constant 0 : index
      %c0_11 = arith.constant 0 : index
      %14 = vector.load %arg5[%c0_10, %c0_11] : memref<1x2048xf32, #tpu.memory_space<vmem>>, vector<1x2048xf32>
      tpu.vector_store %arg5[%c0_10, %c0_11], %13 {strides = array<i32>} : memref<1x2048xf32, #tpu.memory_space<vmem>>, vector<1x2048xf32>,
    } else {
    }
    %c0 = arith.constant 0 : index
    %c0_1 = arith.constant 0 : index
    %3 = vector.load %arg2[%c0, %c0_1] : memref<1x2048xf32, #tpu.memory_space<vmem>>, vector<1x2048xf32>
    %c0_2 = arith.constant 0 : index
    %c0_3 = arith.constant 0 : index
    %4 = vector.load %arg3[%c0_2, %c0_3] : memref<1x2048xf32, #tpu.memory_space<vmem>>, vector<1x2048xf32>
    %5 = arith.subf %3, %4 : vector<1x2048xf32>
    %6 = math.absf %5 : vector<1x2048xf32>
    %c0_4 = arith.constant 0 : index
    %c0_5 = arith.constant 0 : index
    %7 = vector.load %arg5[%c0_4, %c0_5] : memref<1x2048xf32, #tpu.memory_space<vmem>>, vector<1x2048xf32>
    %8 = arith.addf %7, %6 : vector<1x2048xf32>
    %c0_6 = arith.constant 0 : index
    %c0_7 = arith.constant 0 : index
    %9 = vector.load %arg5[%c0_6, %c0_7] : memref<1x2048xf32, #tpu.memory_space<vmem>>, vector<1x2048xf32>
    tpu.vector_store %arg5[%c0_6, %c0_7], %8 {strides = array<i32>} : memref<1x2048xf32, #tpu.memory_space<vmem>>, vector<1x2048xf32>,
    %c0_i32_8 = arith.constant 0 : i32
    %10 = arith.cmpi eq, %arg1, %c0_i32_8 : i32
    %11 = arith.extui %10 : i1 to i32
    %c0_i32_9 = arith.constant 0 : i32
    %12 = arith.cmpi ne, %11, %c0_i32_9 : i32
    scf.if %12 {
      %c0_10 = arith.constant 0 : index
      %c0_11 = arith.constant 0 : index
      %13 = vector.load %arg5[%c0_10, %c0_11] : memref<1x2048xf32, #tpu.memory_space<vmem>>, vector<1x2048xf32>
      %14 = vector.shape_cast %13 : vector<1x2048xf32> to vector<1x1x2048xf32>
      %cst = arith.constant dense<0.000000e+00> : vector<1xf32>
      %15 = vector.multi_reduction <add>, %14, %cst [1, 2] : vector<1x1x2048xf32> to vector<1xf32>
      %16 = vector.shape_cast %15 : vector<1xf32> to vector<1x1x1xf32>
      %17 = vector.extract %16[0, 0, 0] : f32 from vector<1x1x1xf32>
      %18 = vector.broadcast %17 : f32 to vector<1x128xf32>
      %c0_12 = arith.constant 0 : index
      %c0_13 = arith.constant 0 : index
      %19 = vector.load %arg4[%c0_12, %c0_13] : memref<1x128xf32, #tpu.memory_space<vmem>>, vector<1x128xf32>
      tpu.vector_store %arg4[%c0_12, %c0_13], %18 {strides = array<i32>} : memref<1x128xf32, #tpu.memory_space<vmem>>, vector<1x128xf32>,
    } else {
    }
    return
  }
  func.func @transform_0(%arg0: i32, %arg1: i32) -> (i32, i32) {
    %c1_i32 = arith.constant 1 : i32
    %0 = arith.muli %arg0, %c1_i32 : i32
    %1 = arith.addi %0, %arg1 : i32
    %c0_i32 = arith.constant 0 : i32
    %c0_i32_0 = arith.constant 0 : i32
    return %1, %c0_i32 : i32, i32
  }
  func.func @transform_1(%arg0: i32, %arg1: i32) -> (i32, i32) {
    %c1_i32 = arith.constant 1 : i32
    %0 = arith.muli %arg0, %c1_i32 : i32
    %1 = arith.addi %0, %arg1 : i32
    %c0_i32 = arith.constant 0 : i32
    %c0_i32_0 = arith.constant 0 : i32
    return %1, %c0_i32 : i32, i32
  }
  func.func @transform_2(%arg0: i32, %arg1: i32) -> (i32, i32) {
    %c0_i32 = arith.constant 0 : i32
    %c0_i32_0 = arith.constant 0 : i32
    return %c0_i32, %arg0 : i32, i32
  }
}

</mosaic_0001>

<bundles_post_ra>
// kernel: tpu_custom_call.1
= control target key start
LH: loop header
LB: loop body
LE: loop exit
PB: predicated region body
PF: predicated region fallthrough
CT: control target
= control target key end

     0   :  { %7 = vsyncpa [#allocation4], 0  ;;  %s294_s0 = inlined_call_operand.hbm [shape: f32[1,2048], index: 0, kind: input, shape index: {}]   ;;  %s295_s1 = inlined_call_operand.hbm [shape: f32[1,2048], index: 1, kind: input, shape index: {}]   ;;  %s296_s2 = inlined_call_operand.hbm [shape: f32[1,128], index: 2, kind: output, shape index: {}]  }
   0x1   :  { %8 = vsyncpa [#allocation7], 0 }
   0x2   :  { %9 = vsyncpa [#allocation5], 0  ;;  %s18_s11 = sshll.u32 %s294_s0, 4  ;;  %s251_s12 = smov [#allocation3]   ;;  %s19_s11 = int_to_ptr.hbm [resolvable:$true] %s18_s11 }
   0x3   :  { %s20_s13 = sshll.u32 %s251_s12, 4  ;;  %s32_s16 = sshll.u32 %s295_s1, 4  ;;  %s21_s13 = int_to_ptr.vmem [resolvable:$true] %s20_s13  ;;  %s33_s16 = int_to_ptr.hbm [resolvable:$true] %s32_s16 }
   0x4   :  { %23 = dma.hbm_to_vmem [thread:$0]  %s19_s11, 256, %s21_s13, [#allocation4]  }
   0x5   :  { %s252_s17 = smov [#allocation6]  }
   0x6   :  { %s34_s18 = sshll.u32 %s252_s17, 4  ;;  %s35_s18 = int_to_ptr.vmem [resolvable:$true] %s34_s18 }
   0x7   :  { %37 = dma.hbm_to_vmem [thread:$0]  %s33_s16, 256, %s35_s18, [#allocation7]  }
   0x8   :  { %245 = dma.done.wait [#allocation4], 256  }
   0x9   :  { %246 = vsyncadd [#allocation4], 4294967040 }
   0xa   :  { %247 = dma.done.wait [#allocation7], 256  }
   0xb   :  { %248 = vsyncadd [#allocation7], 4294967040  ;;  %v54_v0 = vld [vmem:[#allocation3] sm:$0xff]  ;;  %v56_v1 = vld [vmem:[#allocation6] sm:$0xff]  ;;  %vm107_vm0 = vcmask 1040384   ;;  %s253_s0 = smov [#allocation8]  }
   0xc   :  { %v58_v2 = vsub.f32 %v54_v0, %v56_v1  ;;  %v55_v4 = vld [vmem:[#allocation3 + $0x8] sm:$0xff]  ;;  %v57_v5 = vld [vmem:[#allocation6 + $0x8] sm:$0xff]  ;;  %s155_s1 = sshll.u32 %s253_s0, 4  ;;  %s157_s21 = sshll.u32 %s296_s2, 4  ;;  %s156_s1 = int_to_ptr.vmem [resolvable:$true] %s155_s1  ;;  %s158_s21 = int_to_ptr.hbm [resolvable:$true] %s157_s21 }
   0xd   :  { %v59_v10 = vsub.f32 %v55_v4, %v57_v5 }
   0xe   :  { %v60_v3 = vand.u32 2147483647, %v58_v2 }
   0xf   :  { %v61_v19 = vand.u32 2147483647, %v59_v10 }
  0x10   :  { %v75_v6 = vperm.slane %v60_v3, 0  ;;  %v76_v7 = vperm.slane %v60_v3, 1  ;;  %v77_v8 = vperm.slane %v60_v3, 2  ;;  %v78_v9 = vperm.slane %v60_v3, 3 }
  0x11   :  { %v79_v11 = vperm.slane %v60_v3, 4  ;;  %v80_v16 = vperm.slane %v60_v3, 5  ;;  %v81_v20 = vperm.slane %v60_v3, 6  ;;  %v82_v23 = vperm.slane %v60_v3, 7 }
  0x12   :  { %v108_v12 = vsel %vm107_vm0, %v75_v6, 0.0  ;;  %v109_v13 = vsel %vm107_vm0, %v76_v7, 0.0  ;;  %v111_v14 = vsel %vm107_vm0, %v77_v8, 0.0  ;;  %v113_v17 = vsel %vm107_vm0, %v78_v9, 0.0 }
  0x13   :  { %v110_v15 = vadd.f32 %v109_v13, %v108_v12  ;;  %v115_v21 = vsel %vm107_vm0, %v79_v11, 0.0  ;;  %v117_v24 = vsel %vm107_vm0, %v80_v16, 0.0  ;;  %v83_v26 = vperm.slane %v61_v19, 0 }
  0x14   :  { %v119_v27 = vsel %vm107_vm0, %v81_v20, 0.0  ;;  %v84_v29 = vperm.slane %v61_v19, 1  ;;  %v121_v30 = vsel %vm107_vm0, %v82_v23, 0.0  ;;  %v85_v32 = vperm.slane %v61_v19, 2 }
  0x15   :  { %v112_v18 = vadd.f32 %v111_v14, %v110_v15  ;;  %v123_v33 = vsel %vm107_vm0, %v83_v26, 0.0  ;;  %v86_v35 = vperm.slane %v61_v19, 3  ;;  %v87_v38 = vperm.slane %v61_v19, 4 }
  0x16   :  { %v125_v36 = vsel %vm107_vm0, %v84_v29, 0.0  ;;  %v127_v39 = vsel %vm107_vm0, %v85_v32, 0.0  ;;  %v88_v41 = vperm.slane %v61_v19, 5  ;;  %v89_v44 = vperm.slane %v61_v19, 6 }
  0x17   :  { %v114_v22 = vadd.f32 %v113_v17, %v112_v18  ;;  %v129_v42 = vsel %vm107_vm0, %v86_v35, 0.0  ;;  %v131_v45 = vsel %vm107_vm0, %v87_v38, 0.0  ;;  %v90_v47 = vperm.slane %v61_v19, 7 }
  0x18   :  { %v133_v48 = vsel %vm107_vm0, %v88_v41, 0.0  ;;  %v135_v50 = vsel %vm107_vm0, %v89_v44, 0.0 }
  0x19   :  { %v116_v25 = vadd.f32 %v115_v21, %v114_v22  ;;  %v137_v52 = vsel %vm107_vm0, %v90_v47, 0.0 }
  0x1b   :  { %v118_v28 = vadd.f32 %v117_v24, %v116_v25 }
  0x1d   :  { %v120_v31 = vadd.f32 %v119_v27, %v118_v28 }
  0x1f   :  { %v122_v34 = vadd.f32 %v121_v30, %v120_v31 }
  0x21   :  { %v124_v37 = vadd.f32 %v123_v33, %v122_v34 }
  0x23   :  { %v126_v40 = vadd.f32 %v125_v36, %v124_v37 }
  0x25   :  { %v128_v43 = vadd.f32 %v127_v39, %v126_v40 }
  0x27   :  { %v130_v46 = vadd.f32 %v129_v42, %v128_v43 }
  0x29   :  { %v132_v49 = vadd.f32 %v131_v45, %v130_v46 }
  0x2b   :  { %v134_v51 = vadd.f32 %v133_v48, %v132_v49 }
  0x2d   :  { %v136_v53 = vadd.f32 %v135_v50, %v134_v51 }
  0x2f   :  { %v138_v54 = vadd.f32 %v137_v52, %v136_v53 }
  0x31   :  { %139 = vadd.xlane.f32.xlu0 %v138_v54 }
  0xa4   :  { %v140_v55 = vpop.xlane.xlu0 %139 }
  0xa5   :  { %v141_v56 = vrot.slane %v140_v55, 4 }
  0xa7   :  { %v142_v57 = vadd.f32 %v141_v56, %v140_v55 }
  0xa9   :  { %v143_v58 = vrot.slane %v142_v57, 2 }
  0xab   :  { %v144_v59 = vadd.f32 %v143_v58, %v142_v57 }
  0xad   :  { %v145_v60 = vrot.slane %v144_v59, 1 }
  0xaf   :  { %v146_v61 = vadd.f32 %v145_v60, %v144_v59 }
  0xb1   :  { %168 = vpush %v146_v61 }
  0xe2   :  { %s169_s22 = spop %168 }
  0xe3   :  { %v148_v62 = vstv %s169_s22 }
  0xe4   :  { %149 = vst [vmem:[#allocation8] sm:$0x1] %v148_v62 }
  0xe5   :  { %160 = dma.vmem_to_hbm [thread:$0]  %s156_s1, 16, %s158_s21, [#allocation5]  }
  0xe6   :  { %249 = dma.done.wait [#allocation5], 16  }
  0xe7   :  { %250 = vsyncadd [#allocation5], 4294967280 }
  0xe8   :  { %165 = vsyncpa [#allocation4], 1 }
  0xe9   :  { %166 = vsyncpa [#allocation7], 1 }
  0xea   :  { %167 = vsyncpa [#allocation5], 1 }

</bundles_post_ra>
